<compile_context>
chip_gen: v6e
topology: v6e:2x2x1
jax: 0.10.0
libtpu: 0.0.40
codegen_flags: <defaults>
</compile_context>

<pallas_src>
import jax
import jax.numpy as jnp
from jax import lax
from jax.experimental import pallas as pl
from jax.experimental.pallas import tpu as pltpu


def _nlayernorm_kernel(x_ref, w_ref, b_ref, o_ref):
    # x_ref: (B, Nb, d), w_ref/b_ref: (Nb, d), o_ref: (B, Nb, d)
    x = x_ref[...].astype(jnp.float32)
    d = x.shape[-1]

    mean = jnp.mean(x, axis=-1, keepdims=True)
    xc = x - mean
    # torch.Tensor.std defaults to the unbiased estimator (ddof = 1).
    var = jnp.sum(xc * xc, axis=-1, keepdims=True) * (1.0 / (d - 1))
    inv_std = lax.rsqrt(var)                      # EUP slot (free vs. VPU work)

    w = w_ref[...].astype(jnp.float32)[None, :, :]   # (1, Nb, d)
    b = b_ref[...].astype(jnp.float32)[None, :, :]   # (1, Nb, d)
    o_ref[...] = (w * (xc * inv_std) + b).astype(o_ref.dtype)


def _pick_n_block(B, N, d, itemsize, target_bytes=2 << 20):
    """Pick Nb: large tiles, multiple of 8 (sublane), divides N, >=2 grid steps."""
    if N <= 8:
        return N
    nb = max(8, min(N, target_bytes // max(1, B * d * itemsize)))
    nb = (nb // 8) * 8
    # Prefer at least 2 grid steps so a parallel grid axis can use both
    # TensorCores on v7x (no-op on v5e/v6e).
    if nb >= N and N % 2 == 0 and (N // 2) % 8 == 0:
        nb = N // 2
    # Keep blocks evenly dividing N (avoid ragged final block).
    while nb > 8 and N % nb != 0:
        nb -= 8
    if nb < 8 or N % nb != 0:
        return N
    return nb


def nlayernorm(x, weight, bias, *, n_block=None):
    """x: [B, N, d], weight: [N, d], bias: [N, d] -> y: [B, N, d]."""
    B, N, d = x.shape
    assert weight.shape == (N, d) and bias.shape == (N, d)

    itemsize = jnp.dtype(x.dtype).itemsize
    nb = n_block if n_block is not None else _pick_n_block(B, N, d, itemsize)
    assert N % nb == 0
    grid = (N // nb,)

    # TODO(synk): for d < 128 the output store is lane-masked; a packed
    # (merge several slots into one 128-lane slab) layout would be needed for
    # a fully lane-dense store at tiny d.
    cost = pl.CostEstimate(
        flops=8 * B * N * d,
        transcendentals=B * N,
        bytes_accessed=(2 * B * N * d + 2 * N * d) * itemsize,
    )

    return pl.pallas_call(
        _nlayernorm_kernel,
        out_shape=jax.ShapeDtypeStruct((B, N, d), x.dtype),
        grid_spec=pltpu.PrefetchScalarGridSpec(
            num_scalar_prefetch=0,
            grid=grid,
            in_specs=[
                pl.BlockSpec((B, nb, d), lambda i: (0, i, 0)),   # x slab
                pl.BlockSpec((nb, d), lambda i: (i, 0)),         # weight tile
                pl.BlockSpec((nb, d), lambda i: (i, 0)),         # bias tile
            ],
            out_specs=pl.BlockSpec((B, nb, d), lambda i: (0, i, 0)),
        ),
        compiler_params=pltpu.CompilerParams(
            dimension_semantics=("parallel",),
        ),
        cost_estimate=cost,
    )(x, weight, bias)


if __name__ == "__main__":
    # Small shapes consistent with the module: batch=8, n_features=16, d=128
    # (d chosen as a lane-dense multiple of 128).
    B, N, D = 8, 16, 128

    key = jax.random.PRNGKey(0)
    kx, kw, kb = jax.random.split(key, 3)
    x = jax.random.normal(kx, (B, N, D), dtype=jnp.float32)
    # The module initializes weight=ones, bias=zeros; use perturbed random
    # affine params so the correctness check is non-trivial (forward semantics
    # are identical).
    weight = 1.0 + 0.1 * jax.random.normal(kw, (N, D), dtype=jnp.float32)
    bias = 0.1 * jax.random.normal(kb, (N, D), dtype=jnp.float32)

    y = nlayernorm(x, weight, bias)
    y = jax.block_until_ready(y)

    # Reference: same math as the PyTorch module (torch.std is unbiased).
    mean = x.mean(-1, keepdims=True)
    std = jnp.std(x, axis=-1, ddof=1, keepdims=True)
    y_ref = weight[None, :, :] * ((x - mean) / std) + bias[None, :, :]

    assert y.shape == (B, N, D)
    assert jnp.allclose(y, y_ref, atol=1e-4, rtol=1e-4), float(
        jnp.max(jnp.abs(y - y_ref))
    )

    print("KERNEL_OK")
</pallas_src>

<mosaic_0001>
module attributes {stable_mosaic.version = 11 : i64} {
  func.func @_nlayernorm_kernel(%arg0: i32, %arg1: memref<8x8x128xf32, #tpu.memory_space<vmem>>, %arg2: memref<8x128xf32, #tpu.memory_space<vmem>>, %arg3: memref<8x128xf32, #tpu.memory_space<vmem>>, %arg4: memref<8x8x128xf32, #tpu.memory_space<vmem>>) attributes {dimension_semantics = [#tpu.dimension_semantics<parallel>], iteration_bounds = array<i64: 2>, scalar_prefetch = 0 : i64, scratch_operands = 0 : i64, tpu.core_type = #tpu.core_type<tc>, window_params = [{transform_indices = @transform_0, window_bounds = array<i64: 8, 8, 128>}, {transform_indices = @transform_1, window_bounds = array<i64: 8, 128>}, {transform_indices = @transform_2, window_bounds = array<i64: 8, 128>}, {transform_indices = @transform_3, window_bounds = array<i64: 8, 8, 128>}]} {
    %c0 = arith.constant 0 : index
    %c0_0 = arith.constant 0 : index
    %c0_1 = arith.constant 0 : index
    %0 = vector.load %arg1[%c0, %c0_0, %c0_1] : memref<8x8x128xf32, #tpu.memory_space<vmem>>, vector<8x8x128xf32>
    %cst = arith.constant dense<0.000000e+00> : vector<8x8xf32>
    %1 = vector.multi_reduction <add>, %0, %cst [2] : vector<8x8x128xf32> to vector<8x8xf32>
    %2 = vector.shape_cast %1 : vector<8x8xf32> to vector<8x8x1xf32>
    %cst_2 = arith.constant 1.280000e+02 : f32
    %3 = vector.broadcast %cst_2 : f32 to vector<8x8x1xf32>
    %4 = arith.divf %2, %3 : vector<8x8x1xf32>
    %5 = vector.broadcast %4 : vector<8x8x1xf32> to vector<8x8x128xf32>
    %6 = arith.subf %0, %5 : vector<8x8x128xf32>
    %7 = arith.mulf %6, %6 : vector<8x8x128xf32>
    %cst_3 = arith.constant dense<0.000000e+00> : vector<8x8xf32>
    %8 = vector.multi_reduction <add>, %7, %cst_3 [2] : vector<8x8x128xf32> to vector<8x8xf32>
    %9 = vector.shape_cast %8 : vector<8x8xf32> to vector<8x8x1xf32>
    %cst_4 = arith.constant 0.00787401571 : f32
    %10 = vector.broadcast %cst_4 : f32 to vector<8x8x1xf32>
    %11 = arith.mulf %9, %10 : vector<8x8x1xf32>
    %12 = math.rsqrt %11 : vector<8x8x1xf32>
    %c0_5 = arith.constant 0 : index
    %c0_6 = arith.constant 0 : index
    %13 = vector.load %arg2[%c0_5, %c0_6] : memref<8x128xf32, #tpu.memory_space<vmem>>, vector<8x128xf32>
    %14 = vector.shape_cast %13 : vector<8x128xf32> to vector<1x8x128xf32>
    %c0_7 = arith.constant 0 : index
    %c0_8 = arith.constant 0 : index
    %15 = vector.load %arg3[%c0_7, %c0_8] : memref<8x128xf32, #tpu.memory_space<vmem>>, vector<8x128xf32>
    %16 = vector.shape_cast %15 : vector<8x128xf32> to vector<1x8x128xf32>
    %17 = vector.broadcast %12 : vector<8x8x1xf32> to vector<8x8x128xf32>
    %18 = arith.mulf %6, %17 : vector<8x8x128xf32>
    %19 = vector.broadcast %14 : vector<1x8x128xf32> to vector<8x8x128xf32>
    %20 = arith.mulf %19, %18 : vector<8x8x128xf32>
    %21 = vector.broadcast %16 : vector<1x8x128xf32> to vector<8x8x128xf32>
    %22 = arith.addf %20, %21 : vector<8x8x128xf32>
    %c0_9 = arith.constant 0 : index
    %c0_10 = arith.constant 0 : index
    %c0_11 = arith.constant 0 : index
    %23 = vector.load %arg4[%c0_9, %c0_10, %c0_11] : memref<8x8x128xf32, #tpu.memory_space<vmem>>, vector<8x8x128xf32>
    tpu.vector_store %arg4[%c0_9, %c0_10, %c0_11], %22 {strides = array<i32>} : memref<8x8x128xf32, #tpu.memory_space<vmem>>, vector<8x8x128xf32>,
    return
  }
  func.func @transform_0(%arg0: i32) -> (i32, i32, i32) {
    %c0_i32 = arith.constant 0 : i32
    %c0_i32_0 = arith.constant 0 : i32
    %c0_i32_1 = arith.constant 0 : i32
    return %c0_i32, %arg0, %c0_i32_0 : i32, i32, i32
  }
  func.func @transform_1(%arg0: i32) -> (i32, i32) {
    %c0_i32 = arith.constant 0 : i32
    %c0_i32_0 = arith.constant 0 : i32
    return %arg0, %c0_i32 : i32, i32
  }
  func.func @transform_2(%arg0: i32) -> (i32, i32) {
    %c0_i32 = arith.constant 0 : i32
    %c0_i32_0 = arith.constant 0 : i32
    return %arg0, %c0_i32 : i32, i32
  }
  func.func @transform_3(%arg0: i32) -> (i32, i32, i32) {
    %c0_i32 = arith.constant 0 : i32
    %c0_i32_0 = arith.constant 0 : i32
    %c0_i32_1 = arith.constant 0 : i32
    return %c0_i32, %arg0, %c0_i32_0 : i32, i32, i32
  }
}

</mosaic_0001>

<bundles_post_ra>
// kernel: tpu_custom_call.1
= control target key start
LH: loop header
LB: loop body
LE: loop exit
PB: predicated region body
PF: predicated region fallthrough
CT: control target
= control target key end

     0   :  { %s1067_s0 = inlined_call_operand.hbm [shape: f32[8,16,128], index: 0, kind: input, shape index: {}]   ;;  %s1068_s1 = inlined_call_operand.hbm [shape: f32[16,128], index: 1, kind: input, shape index: {}]   ;;  %s1069_s2 = inlined_call_operand.hbm [shape: f32[16,128], index: 2, kind: input, shape index: {}]   ;;  %s1070_s3 = inlined_call_operand.hbm [shape: f32[8,16,128], index: 3, kind: output, shape index: {}]  }
   0x1   :  { %1079 = sst [smem:[#allocation17_spill]] %s1067_s0 }
   0x2   :  { %1080 = sst [smem:[#allocation18_spill]] %s1068_s1 }
   0x3   :  { %8 = vsyncpa [#allocation3], 0 }
   0x4   :  { %10 = vsyncpa [#allocation3 + $0x1], 0 }
   0x5   :  { %11 = vsyncpa [#allocation6], 0 }
   0x6   :  { %13 = vsyncpa [#allocation6 + $0x1], 0 }
   0x7   :  { %14 = vsyncpa [#allocation4], 0 }
   0x8   :  { %16 = vsyncpa [#allocation4 + $0x1], 0  ;;  %s783_s12 = smov 0   ;;  %s785_s13 = smov 0  }
   0x9   :  { %s787_s14 = smov 0   ;;  %s789_s15 = smov 0  }
   0xa LB: > { %1081 = sst [smem:[#allocation12_spill]] %s747_s14  ;;  %s804_s16 = sadd.s32 4294967295, %s751_s15   ;;  %s751_s15 = sphi %s789_s15, %s1105_s15   ;;  %s747_s14 = sphi %s787_s14, %s1107_s14   ;;  %s743_s13 = sphi %s785_s13, %s1109_s13   ;;  %s739_s12 = sphi %s783_s12, %s1108_s12  }
   0xb   : > { %1082 = sst [smem:[#allocation13_spill]] %s751_s15  ;;  %s503_s17 = sadd.s32 4294967294, %s751_s15  }
   0xc   : > { %s808_s18 = sadd.s32 1, %s751_s15   ;;  %s29_s19 = sadd.s32 1, %s747_s14 }
   0xd   : > { %1083 = sst [smem:[#allocation14_spill]] %s808_s18  ;;  %s26_s20 = ssub.s32 %s751_s15, %s808_s18 }
   0xe   : > { %p36_p0 = scmp.ne.s32.totalorder %s747_s14, %s743_s13  ;;  %p27_p1 = scmp.eq.s32.totalorder %s26_s20, 0 }
   0xf   : > { %p37_p2 = scmp.eq.s32.totalorder %s751_s15, 0  ;;  %p42_p3 = scmp.ne.s32.totalorder %s743_s13, %s739_s12 }
  0x10   : > { %p43_p4 = scmp.eq.s32.totalorder %s804_s16, 0  ;;  %p118_p7 = scmp.eq.s32.totalorder %s804_s16, 1 }
  0x11   : > { %s820_s21 = scalar_select %p27_p1, %s747_s14, %s29_s19  }
  0x12   : > { %p822_p5 = por %p37_p2, %p36_p0  ;;  %p826_p6 = por %p43_p4, %p42_p3 }
  0x13   : > { %1084 = sst [smem:[#allocation15_spill]] %s820_s21  ;;  %p124_p8 = scmp.eq.s32.totalorder %s503_s17, 1 }
  0x14   : > { %s1086_s23 = scalar_select %p826_p6, 1, 0 }
  0x15   : > { %p543_p10 = scmp.lt.s32.totalorder %s751_s15, 2  ;;  %p833_p11 = por %p118_p7, %p36_p0 }
  0x16   : > { %p837_p12 = por %p124_p8, %p42_p3  ;;  %s842_s26 = sand.u32 1, %s747_s14  }
  0x17   : > { %s1087_s24 = scalar_select %p833_p11, 1, 0 }
  0x18   : > { %s1088_s25 = scalar_select %p837_p12, 1, 0 }
  0x19   : > { %s845_s27 = sshll.u32 %s751_s15, 7  ;;  %s506_s28 = sshll.u32 %s842_s26, 6 }
  0x1a   : > { %1089 = sst [smem:[#allocation16_spill]] %s1088_s25  ;;  %s148_s5 = scalar_lea.vmem [#allocation2], %s506_s28 }
  0x1b   : > { %s1090_s0 = sld [smem:[#allocation17_spill]]  ;;  %s154_s6 = sshll.u32 %s148_s5, 4  ;;  %s860_s6 = int_to_ptr.vmem [resolvable:$true] %s154_s6 }
  0x1c   : > { %p856_p13 = pnand %p543_p10, %p822_p5  ;;  %s164_s8 = sand.u32 1, %s751_s15  }
  0x1d   : > { %s1071_s9 = sshll.u32 %s842_s26, 3  ;;  %s1092_s1 = sld [smem:[#allocation18_spill]] }
  0x1e   : > { %s168_s19 = scalar_lea.vmem [#allocation5], %s1071_s9  ;;  %s874_s22 = scalar_lea.sflag [#allocation6], %s164_s8 }
  0x1f   : > { %s175_s20 = sshll.u32 %s168_s19, 4  ;;  %p880_p3 = pneg %p856_p13  ;;  %s176_s20 = int_to_ptr.vmem [resolvable:$true] %s175_s20 }
  0x21   : > { %s852_s4 = scalar_lea.hbm %s1090_s0, %s845_s27 }
  0x23   : > { %s868_s17 = scalar_lea.hbm %s1092_s1, %s845_s27  ;;  %s604_s10 = scalar_lea.hbm %s1092_s1, 256 }
  0x24   : > { %s599_s28 = scalar_lea.hbm %s868_s17, 128  ;;  %p605_p7 = scmp.lt.s32.totalorder %s868_s17, %s1092_s1 }
  0x25   : > { %p600_p2 = scmp.ne.s32.totalorder %s868_s17, %s599_s28  ;;  %p606_p8 = scmp.lt.s32.totalorder %s604_s10, %s599_s28 }
  0x27   : > { %p602_p4 = pnand %p880_p3, %p600_p2  ;;  %p607_p10 = por %p606_p8, %p605_p7 }
  0x29   : > { %p603_p5 = pneg %p602_p4 }
  0x2b   : > { %p608_p9 = pnand %p607_p10, %p603_p5 }
  0x2d   : > { %611 = shalt.err (!%p608_p9)
}
  0x2e   : > { %s612_s8 = scalar_lea.vmem %s176_s20, 128  ;;  %s753_s9 = smov [#allocation5]  }
  0x2f   : > { %p613_p0 = scmp.ne.s32.totalorder %s176_s20, %s612_s8  ;;  %s617_s21 = sshll.u32 %s753_s9, 4  ;;  %s618_s21 = int_to_ptr.vmem [resolvable:$false] %s617_s21 }
  0x30   : > { %s619_s14 = scalar_lea.vmem %s618_s21, 256  ;;  %p620_p2 = scmp.lt.s32.totalorder %s176_s20, %s618_s21 }
  0x31   : > { %p615_p1 = pnand %p613_p0, %p880_p3  ;;  %p621_p4 = scmp.lt.s32.totalorder %s619_s14, %s612_s8 }
  0x33   : > { %p616_p12 = pneg %p615_p1  ;;  %p622_p11 = por %p621_p4, %p620_p2 }
  0x35   : > { %p623_p6 = pnand %p622_p11, %p616_p12 }
  0x37   : > { %626 = shalt.err (!%p623_p6)
}
  0x38   : > { %535 = dma.hbm_to_vmem [thread:$0]  (!%p856_p13), %s868_s17, 128, %s176_s20, %s874_s22  }
  0x39   : > { %p1094_p9 = scmp.lt.s32.totalorder %s751_s15, 3  ;;  %p1095_p0 = scmp.ge.s32.totalorder %s751_s15, 1 }
  0x3a   : > { %s145_s14 = scalar_lea.sflag [#allocation3], %s842_s26  ;;  %s627_s9 = scalar_lea.hbm %s852_s4, 1024 }
  0x3b   : > { %p903_p1 = pnand %p1095_p0, %p1094_p9  ;;  %p628_p6 = scmp.ne.s32.totalorder %s852_s4, %s627_s9 }
  0x3c   : > { %s632_s5 = scalar_lea.hbm %s1090_s0, 2048  ;;  %p633_p5 = scmp.lt.s32.totalorder %s852_s4, %s1090_s0 }
  0x3d   : > { %s1096_s21 = scalar_select %p903_p1, 1, 0 }
  0x3e   : > { %p630_p11 = pnand %p628_p6, %p880_p3  ;;  %p634_p7 = scmp.lt.s32.totalorder %s632_s5, %s627_s9 }
  0x40   : > { %p631_p12 = pneg %p630_p11  ;;  %p635_p8 = por %p634_p7, %p633_p5 }
  0x42   : > { %p636_p10 = pnand %p635_p8, %p631_p12 }
  0x44   : > { %639 = shalt.err (!%p636_p10)
}
  0x45   : > { %s640_s17 = scalar_lea.vmem %s860_s6, 1024  ;;  %s754_s20 = smov [#allocation2]  }
  0x46   : > { %p641_p2 = scmp.ne.s32.totalorder %s860_s6, %s640_s17  ;;  %s645_s19 = sshll.u32 %s754_s20, 4  ;;  %s646_s19 = int_to_ptr.vmem [resolvable:$false] %s645_s19 }
  0x47   : > { %s647_s8 = scalar_lea.vmem %s646_s19, 2048  ;;  %p648_p0 = scmp.lt.s32.totalorder %s860_s6, %s646_s19 }
  0x48   : > { %p643_p4 = pnand %p641_p2, %p880_p3  ;;  %p649_p6 = scmp.lt.s32.totalorder %s647_s8, %s640_s17 }
  0x4a   : > { %p644_p9 = pneg %p643_p4  ;;  %p650_p11 = por %p649_p6, %p648_p0 }
  0x4c   : > { %p651_p1 = pnand %p650_p11, %p644_p9 }
  0x4e   : > { %654 = shalt.err (!%p651_p1)
}
  0x4f   : > { %s755_s9 = smov 256   ;;  %s756_s28 = smov 128  }
  0x50   : > { %s757_s30 = smov 8   ;;  %s191_s11 = scalar_lea.hbm %s1069_s2, %s845_s27 }
  0x51   : > { %532 = dma.hbm_to_vmem [thread:$0]  (!%p856_p13), %s852_s4, 1024, %s860_s6, %s145_s14, %s755_s9, %s756_s28, %s757_s30  }
  0x52   : > { %s1097_s17 = sshll.u32 %s842_s26, 3  ;;  %s655_s8 = scalar_lea.hbm %s191_s11, 128 }
  0x53   : > { %s186_s20 = scalar_lea.vmem [#allocation7], %s1097_s17  ;;  %p656_p1 = scmp.ne.s32.totalorder %s191_s11, %s655_s8 }
  0x54   : > { %s193_s19 = sshll.u32 %s186_s20, 4  ;;  %s660_s18 = scalar_lea.hbm %s1069_s2, 256  ;;  %s194_s19 = int_to_ptr.vmem [resolvable:$true] %s193_s19 }
  0x55   : > { %p658_p12 = pnand %p656_p1, %p880_p3  ;;  %p661_p7 = scmp.lt.s32.totalorder %s191_s11, %s1069_s2 }
  0x56   : > { %p662_p8 = scmp.lt.s32.totalorder %s660_s18, %s655_s8 }
  0x57   : > { %p659_p5 = pneg %p658_p12 }
  0x58   : > { %p663_p10 = por %p662_p8, %p661_p7 }
  0x5a   : > { %p664_p2 = pnand %p663_p10, %p659_p5 }
  0x5c   : > { %667 = shalt.err (!%p664_p2)
}
  0x5d   : > { %s668_s26 = scalar_lea.vmem %s194_s19, 128  ;;  %s758_s27 = smov [#allocation7]  }
  0x5e   : > { %p669_p4 = scmp.ne.s32.totalorder %s194_s19, %s668_s26  ;;  %s673_s4 = sshll.u32 %s758_s27, 4  ;;  %s674_s4 = int_to_ptr.vmem [resolvable:$false] %s673_s4 }
  0x5f   : > { %s675_s6 = scalar_lea.vmem %s674_s4, 256  ;;  %p676_p6 = scmp.lt.s32.totalorder %s194_s19, %s674_s4 }
  0x60   : > { %p671_p9 = pnand %p669_p4, %p880_p3  ;;  %p677_p11 = scmp.lt.s32.totalorder %s675_s6, %s668_s26 }
  0x62   : > { %p672_p0 = pneg %p671_p9  ;;  %p678_p1 = por %p677_p11, %p676_p6 }
  0x64   : > { %p679_p12 = pnand %p678_p1, %p672_p0 }
  0x66   : > { %682 = shalt.err (!%p679_p12)
}
  0x67   : > { %538 = dma.hbm_to_vmem [thread:$0]  (!%p856_p13), %s191_s11, 128, %s194_s19, %s874_s22  }
  0x68   : > { %p1098_p5 = scmp.ne.s32.totalorder %s1096_s21, 0 }
  0x69   : > { %s952_s0 = sand.u32 (!%p1098_p5), 1, %s743_s13   ;;  %p1099_p3 = scmp.ne.s32.totalorder (!%p1098_p5), %s1086_s23, 0 }
  0x6a   : > { %202 = sbr.rel (%p1098_p5) target bundleno = 451 (0x1c3), region = 32  ;;  %s513_s1 = sshll.u32 (!%p1098_p5), %s952_s0, 6 }
  0x6b   : > { %s205_s15 = scalar_lea.sflag (!%p1098_p5), [#allocation3], %s952_s0  ;;  %s208_s18 = scalar_lea.vmem (!%p1098_p5), [#allocation2], %s513_s1 }
  0x6f   : > { %726 = dma.done.wait (%p1099_p3), %s205_s15, 1024  }
  0x70   : > { %728 = vsyncadd (%p1099_p3), %s205_s15, 4294966272  ;;  %s213_s25 = sand.u32 1, %s804_s16   ;;  %s514_s7 = sshll.u32 %s952_s0, 3 }
  0x71   : > { %s214_s22 = scalar_lea.sflag [#allocation6], %s213_s25  ;;  %s966_s29 = scalar_lea.vmem [#allocation5], %s514_s7 }
  0x72   : > { %730 = dma.done.wait (%p1099_p3), %s214_s22, 256  }
  0x73   : > { %732 = vsyncadd (%p1099_p3), %s214_s22, 4294967040  ;;  %v259_v0 = vld [vmem:[%s208_s18] sm:$0xff]  ;;  %v261_v1 = vld [vmem:[%s208_s18 + $0x10] sm:$0xff]  ;;  %s226_s23 = scalar_lea.vmem [#allocation7], %s514_s7  ;;  %s1002_s21 = scalar_lea.vmem [#allocation8], %s513_s1 }
  0x74   : > { %267 = vadd.xlane.f32.xlu0 %v259_v0  ;;  %271 = vadd.xlane.f32.xlu1 %v261_v1  ;;  %v260_v2 = vld [vmem:[%s208_s18 + $0x8] sm:$0xff]  ;;  %v262_v3 = vld [vmem:[%s208_s18 + $0x18] sm:$0xff]  ;;  %v263_v4 = vld [vmem:[%s208_s18 + $0x20] sm:$0xff]  ;;  %s518_s14 = sshll.u32 %s804_s16, 7  ;;  %s387_s9 = sshll.u32 %s1002_s21, 4  ;;  %s1023_s9 = int_to_ptr.vmem [resolvable:$true] %s387_s9 }
  0x75   : > { %v264_v5 = vld [vmem:[%s208_s18 + $0x28] sm:$0xff]  ;;  %v265_v6 = vld [vmem:[%s208_s18 + $0x30] sm:$0xff]  ;;  %v266_v7 = vld [vmem:[%s208_s18 + $0x38] sm:$0xff]  ;;  %s1020_s5 = scalar_lea.hbm %s1070_s3, %s518_s14  ;;  %s375_s16 = scalar_lea.sflag [#allocation4], %s952_s0 }
  0x76   : > { %v340_v55 = vld [vmem:[%s966_s29] sm:$0xff]  ;;  %v341_v59 = vld [vmem:[%s226_s23] sm:$0xff]  ;;  %s683_s10 = scalar_lea.vmem %s1023_s9, 1024  ;;  %p1100_p7 = scmp.ne.s32.totalorder %s1087_s24, 0 }
  0x77   : > { %p684_p13 = scmp.ne.s32.totalorder %s1023_s9, %s683_s10  ;;  %s759_s11 = smov [#allocation8]  }
  0x78   : > { %269 = vadd.xlane.f32.xlu0 %v260_v2  ;;  %273 = vadd.xlane.f32.xlu1 %v262_v3  ;;  %s687_s17 = sshll.u32 %s759_s11, 4  ;;  %s688_s17 = int_to_ptr.vmem [resolvable:$false] %s687_s17 }
  0x79   : > { %p685_p8 = pnand %p684_p13, %p1100_p7  ;;  %s689_s20 = scalar_lea.vmem %s688_s17, 2048 }
  0x7a   : > { %p690_p2 = scmp.lt.s32.totalorder %s1023_s9, %s688_s17  ;;  %p691_p4 = scmp.lt.s32.totalorder %s689_s20, %s683_s10 }
  0x7b   : > { %p686_p10 = pneg %p685_p8 }
  0x7c   : > { %275 = vadd.xlane.f32.xlu0 %v263_v4  ;;  %277 = vadd.xlane.f32.xlu1 %v264_v5  ;;  %p692_p9 = por %p691_p4, %p690_p2 }
  0x7e   : > { %p693_p0 = pnand %p692_p9, %p686_p10 }
  0x80   : > { %279 = vadd.xlane.f32.xlu0 %v265_v6  ;;  %281 = vadd.xlane.f32.xlu1 %v266_v7 }
  0xfd   : > { %v268_v8 = vpop.xlane.xlu0 %267  ;;  %v272_v9 = vpop.xlane.xlu1 %271 }
  0xfe   : > { %v284_v10 = vmul.f32 0.0078125, %v268_v8  ;;  %v286_v11 = vmul.f32 0.0078125, %v272_v9 }
 0x100   : > { %v292_v12 = vsub.f32 %v259_v0, %v284_v10  ;;  %v972_v13 = vsub.f32 %v261_v1, %v286_v11 }
 0x101   : > { %v270_v14 = vpop.xlane.xlu0 %269  ;;  %v274_v15 = vpop.xlane.xlu1 %273 }
 0x102   : > { %v285_v16 = vmul.f32 0.0078125, %v270_v14  ;;  %v300_v17 = vmul.f32 %v292_v12, %v292_v12  ;;  %v287_v18 = vmul.f32 0.0078125, %v274_v15  ;;  %v302_v21 = vmul.f32 %v972_v13, %v972_v13 }
 0x104   : > { %v293_v19 = vsub.f32 %v260_v2, %v285_v16  ;;  %308 = vadd.xlane.f32.xlu0 %v300_v17  ;;  %v974_v20 = vsub.f32 %v262_v3, %v287_v18 }
 0x105   : > { %v276_v22 = vpop.xlane.xlu0 %275  ;;  %v278_v23 = vpop.xlane.xlu1 %277 }
 0x106   : > { %v288_v24 = vmul.f32 0.0078125, %v276_v22  ;;  %v301_v25 = vmul.f32 %v293_v19, %v293_v19  ;;  %v289_v26 = vmul.f32 0.0078125, %v278_v23  ;;  %v303_v29 = vmul.f32 %v974_v20, %v974_v20 }
 0x108   : > { %v978_v27 = vsub.f32 %v263_v4, %v288_v24  ;;  %312 = vadd.xlane.f32.xlu0 %v302_v21  ;;  %310 = vadd.xlane.f32.xlu1 %v301_v25  ;;  %v980_v28 = vsub.f32 %v264_v5, %v289_v26 }
 0x109   : > { %v280_v30 = vpop.xlane.xlu0 %279  ;;  %v282_v31 = vpop.xlane.xlu1 %281 }
 0x10a   : > { %v290_v32 = vmul.f32 0.0078125, %v280_v30  ;;  %v304_v33 = vmul.f32 %v978_v27, %v978_v27  ;;  %v291_v34 = vmul.f32 0.0078125, %v282_v31  ;;  %v305_v37 = vmul.f32 %v980_v28, %v980_v28 }
 0x10c   : > { %v986_v35 = vsub.f32 %v265_v6, %v290_v32  ;;  %314 = vadd.xlane.f32.xlu1 %v303_v29  ;;  %316 = vadd.xlane.f32.xlu0 %v304_v33  ;;  %v988_v36 = vsub.f32 %v266_v7, %v291_v34 }
 0x10e   : > { %v306_v38 = vmul.f32 %v986_v35, %v986_v35  ;;  %v307_v39 = vmul.f32 %v988_v36, %v988_v36 }
 0x110   : > { %318 = vadd.xlane.f32.xlu1 %v305_v37  ;;  %320 = vadd.xlane.f32.xlu0 %v306_v38 }
 0x114   : > { %322 = vadd.xlane.f32.xlu1 %v307_v39 }
 0x18d   : > { %v309_v40 = vpop.xlane.xlu0 %308 }
 0x18e   : > { %v324_v41 = vmul.f32 0.007874016, %v309_v40 }
 0x190   : > { %583 = vrsqrt.f32 %v324_v41 }
 0x191   : > { %v311_v42 = vpop.xlane.xlu1 %310  ;;  %v313_v43 = vpop.xlane.xlu0 %312 }
 0x192   : > { %v325_v44 = vmul.f32 0.007874016, %v311_v42  ;;  %v326_v45 = vmul.f32 0.007874016, %v313_v43 }
 0x194   : > { %585 = vrsqrt.f32 %v325_v44 }
 0x195   : > { %587 = vrsqrt.f32 %v326_v45  ;;  %v315_v46 = vpop.xlane.xlu1 %314  ;;  %v317_v47 = vpop.xlane.xlu0 %316 }
 0x196   : > { %v327_v48 = vmul.f32 0.007874016, %v315_v46  ;;  %v328_v49 = vmul.f32 0.007874016, %v317_v47 }
 0x198   : > { %589 = vrsqrt.f32 %v327_v48 }
 0x199   : > { %591 = vrsqrt.f32 %v328_v49  ;;  %v319_v50 = vpop.xlane.xlu1 %318  ;;  %v321_v51 = vpop.xlane.xlu0 %320 }
 0x19a   : > { %v329_v52 = vmul.f32 0.007874016, %v319_v50  ;;  %v330_v53 = vmul.f32 0.007874016, %v321_v51 }
 0x19c   : > { %593 = vrsqrt.f32 %v329_v52 }
 0x19d   : > { %v584_v54 = vpop.eup %583  ;;  %595 = vrsqrt.f32 %v330_v53  ;;  %v323_v56 = vpop.xlane.xlu1 %322 }
 0x19e   : > { %v342_v57 = vmul.f32 %v584_v54, %v292_v12  ;;  %v331_v58 = vmul.f32 0.007874016, %v323_v56 }
 0x1a0   : > { %v350_v60 = vmul.f32 %v342_v57, %v340_v55  ;;  %597 = vrsqrt.f32 %v331_v58 }
 0x1a1   : > { %v586_v61 = vpop.eup %585 }
 0x1a2   : > { %v588_v62 = vpop.eup %587  ;;  %v358_v63 = vadd.f32 %v350_v60, %v341_v59  ;;  %v343_v0 = vmul.f32 %v586_v61, %v293_v19 }
 0x1a3   : > { %v344_v1 = vmul.f32 %v588_v62, %v972_v13 }
 0x1a4   : > { %366 = vst [vmem:[%s1002_s21] sm:$0xff] %v358_v63  ;;  %v351_v2 = vmul.f32 %v343_v0, %v340_v55 }
 0x1a5   : > { %v590_v3 = vpop.eup %589  ;;  %v352_v4 = vmul.f32 %v344_v1, %v340_v55 }
 0x1a6   : > { %v592_v5 = vpop.eup %591  ;;  %v359_v6 = vadd.f32 %v351_v2, %v341_v59  ;;  %v345_v7 = vmul.f32 %v590_v3, %v974_v20 }
 0x1a7   : > { %v360_v8 = vadd.f32 %v352_v4, %v341_v59  ;;  %v346_v9 = vmul.f32 %v592_v5, %v978_v27 }
 0x1a8   : > { %367 = vst [vmem:[%s1002_s21 + $0x8] sm:$0xff] %v359_v6  ;;  %v353_v10 = vmul.f32 %v345_v7, %v340_v55 }
 0x1a9   : > { %v594_v11 = vpop.eup %593  ;;  %368 = vst [vmem:[%s1002_s21 + $0x10] sm:$0xff] %v360_v8  ;;  %v354_v12 = vmul.f32 %v346_v9, %v340_v55 }
 0x1aa   : > { %v596_v13 = vpop.eup %595  ;;  %v361_v14 = vadd.f32 %v353_v10, %v341_v59  ;;  %v347_v15 = vmul.f32 %v594_v11, %v980_v28 }
 0x1ab   : > { %v362_v16 = vadd.f32 %v354_v12, %v341_v59  ;;  %v348_v17 = vmul.f32 %v596_v13, %v986_v35 }
 0x1ac   : > { %369 = vst [vmem:[%s1002_s21 + $0x18] sm:$0xff] %v361_v14  ;;  %v355_v18 = vmul.f32 %v347_v15, %v340_v55 }
 0x1ad   : > { %v598_v19 = vpop.eup %597  ;;  %370 = vst [vmem:[%s1002_s21 + $0x20] sm:$0xff] %v362_v16  ;;  %v356_v20 = vmul.f32 %v348_v17, %v340_v55 }
 0x1ae   : > { %v363_v21 = vadd.f32 %v355_v18, %v341_v59  ;;  %v349_v22 = vmul.f32 %v598_v19, %v988_v36 }
 0x1af   : > { %v364_v23 = vadd.f32 %v356_v20, %v341_v59 }
 0x1b0   : > { %371 = vst [vmem:[%s1002_s21 + $0x28] sm:$0xff] %v363_v21  ;;  %v357_v24 = vmul.f32 %v349_v22, %v340_v55 }
 0x1b1   : > { %372 = vst [vmem:[%s1002_s21 + $0x30] sm:$0xff] %v364_v23 }
 0x1b2   : > { %v365_v25 = vadd.f32 %v357_v24, %v341_v59 }
 0x1b4   : > { %373 = vst [vmem:[%s1002_s21 + $0x38] sm:$0xff] %v365_v25 }
 0x1b5   : > { %696 = shalt.err (!%p693_p0)
}
 0x1b6   : > { %s697_s19 = scalar_lea.hbm %s1020_s5, 1024  ;;  %s701_s27 = scalar_lea.hbm %s1070_s3, 2048 }
 0x1b7   : > { %p698_p6 = scmp.ne.s32.totalorder %s1020_s5, %s697_s19  ;;  %p702_p12 = scmp.lt.s32.totalorder %s1020_s5, %s1070_s3 }
 0x1b8   : > { %p703_p5 = scmp.lt.s32.totalorder %s701_s27, %s697_s19 }
 0x1b9   : > { %p699_p11 = pnand %p698_p6, %p1100_p7 }
 0x1ba   : > { %p704_p3 = por %p703_p5, %p702_p12 }
 0x1bb   : > { %p700_p1 = pneg %p699_p11 }
 0x1bd   : > { %p705_p13 = pnand %p704_p3, %p700_p1 }
 0x1bf   : > { %708 = shalt.err (!%p705_p13)
}
 0x1c0   : > { %s760_s1 = smov 128   ;;  %s761_s15 = smov 256  }
 0x1c1   : > { %s762_s18 = smov 8  }
 0x1c2   : > { %527 = dma.vmem_to_hbm [thread:$0]  (%p1100_p7), %s1023_s9, 1024, %s1020_s5, %s375_s16, %s760_s1, %s761_s15, %s762_s18  }
 0x1c3 PF: > { %s1101_s25 = sld [smem:[#allocation16_spill]]  ;;  %s402_s22 = sand.u32 1, %s739_s12  }
 0x1c4   : > { %s1102_s7 = sld [smem:[#allocation13_spill]]  ;;  %s403_s29 = scalar_lea.sflag [#allocation4], %s402_s22 }
 0x1c9   : > { %p1103_p8 = scmp.ne.s32.totalorder %s1101_s25, 0 }
 0x1ca   : > { %p1104_p10 = scmp.ge.s32.totalorder %s1102_s7, 2 }
 0x1cc   : > { %p540_p2 = pnand %p1104_p10, %p1103_p8 }
 0x1ce   : > { %p541_p4 = pneg %p540_p2 }
 0x1d0   : > { %734 = dma.done.wait (%p541_p4), %s403_s29, 1024  }
 0x1d1   : > { %736 = vsyncadd (%p541_p4), %s403_s29, 4294966272  ;;  %s1105_s15 = sld [smem:[#allocation14_spill]]  ;;  %s1108_s12 = smov %s743_s13 }
 0x1d2   : > { %s1106_s23 = sld [smem:[#allocation12_spill]] }
 0x1d3   : > { %s1107_s14 = sld [smem:[#allocation15_spill]] }
 0x1d7   : > { %p19_p9 = scmp.ge.s32.totalorder %s1105_s15, 4  }
 0x1d8   : > { %s1109_s13 = smov %s1106_s23 }
 0x1d9   :  { %21 = sbr.rel (!%p19_p9) target bundleno = 10 (0xa), region = 101 }
 0x1de   :  { %408 = vsyncpa [#allocation3], 1 }
 0x1df   :  { %410 = vsyncpa [#allocation3 + $0x1], 1 }
 0x1e0   :  { %411 = vsyncpa [#allocation6], 1 }
 0x1e1   :  { %413 = vsyncpa [#allocation6 + $0x1], 1 }
 0x1e2   :  { %414 = vsyncpa [#allocation4], 1 }
 0x1e3   :  { %416 = vsyncpa [#allocation4 + $0x1], 1 }

</bundles_post_ra>
